<compile_context>
chip_gen: v7x
topology: tpu7x:2x2x1
jax: 0.10.0
libtpu: 0.0.40
codegen_flags: <defaults>
</compile_context>

<pallas_src>
import functools

import jax
import jax.numpy as jnp
from jax import lax
from jax.experimental import pallas as pl
from jax.experimental.pallas import tpu as pltpu


def _embed_gather_kernel(ids_ref, table_ref, out_ref, sem, *, in_flight):
    """Gather one tile of embedding rows from the HBM table.

    ids_ref:   (n_total,) int32 in SMEM (scalar-prefetched token ids)
    table_ref: (V, H) in HBM (memory_space=pl.ANY)
    out_ref:   (T, H) VMEM output tile for this grid step
    sem:       (in_flight,) DMA semaphores bounding in-flight row copies
    """
    tile = pl.program_id(0)
    tokens_per_tile = out_ref.shape[0]
    base = tile * tokens_per_tile

    def start_row(t):
        # Row `t` of this tile  <-  table row ids[base + t].
        tok = ids_ref[base + t]
        pltpu.make_async_copy(
            table_ref.at[pl.ds(tok, 1), :],
            out_ref.at[pl.ds(t, 1), :],
            sem.at[t % in_flight],
        ).start()

    def wait_row(t):
        # Wait only needs the destination size + semaphore; use a dummy
        # (static) source so no SMEM read sits right before the wait.
        pltpu.make_async_copy(
            table_ref.at[pl.ds(0, 1), :],
            out_ref.at[pl.ds(t, 1), :],
            sem.at[t % in_flight],
        ).wait()

    # Prime the pipeline with the first `in_flight` row fetches.
    for t in range(min(in_flight, tokens_per_tile)):
        start_row(t)

    # Steady state: retire row t, immediately issue row t + in_flight.
    def body(t, carry):
        wait_row(t)

        @pl.when(t + in_flight < tokens_per_tile)
        def _():
            start_row(t + in_flight)

        return carry

    lax.fori_loop(0, tokens_per_tile, body, 0)


def _round_up(x, m):
    return ((x + m - 1) // m) * m


def _pick_tile(n_tokens, max_tile):
    """Pick a token-tile size.

    Prefer (a) a single full-extent block, then (b) a multiple of 8 that
    divides n_tokens (no padding, tail slice becomes a no-op), else
    (c) a multiple of 8 with padding.
    Returns (tile, n_total).
    """
    if n_tokens <= max_tile:
        return n_tokens, n_tokens          # single block == full dim
    for t in range(max_tile - (max_tile % 8), 7, -8):
        if n_tokens % t == 0:
            return t, n_tokens             # divides exactly, multiple of 8
    tile = max(8, (max_tile // 8) * 8)
    return tile, _round_up(n_tokens, tile)


def gpt_embeddings_forward(input_ids, embed_table, *, tokens_per_tile=256,
                           in_flight=8):
    """Pallas equivalent of GPTEmbeddings.forward.

    input_ids:   (..., S) integer array of token ids
    embed_table: (vocab_size, hidden_size) embedding weight
    returns:     (prod(leading_dims), S, hidden_size), dtype of embed_table
    """
    input_shape = input_ids.shape
    seq_len = input_shape[-1]
    ids_2d = input_ids.reshape(-1, seq_len).astype(jnp.int32)   # .view(-1, S)
    batch_flat = ids_2d.shape[0]

    vocab_size, hidden = embed_table.shape
    n_tokens = batch_flat * seq_len

    tile, n_total = _pick_tile(n_tokens, max(8, tokens_per_tile))

    # Clamp ids so an out-of-range id cannot cause an OOB HBM DMA.
    ids_flat = jnp.clip(ids_2d.reshape(-1), 0, vocab_size - 1)
    if n_total != n_tokens:
        ids_flat = jnp.pad(ids_flat, (0, n_total - n_tokens))

    grid = (n_total // tile,)
    kernel = functools.partial(_embed_gather_kernel, in_flight=in_flight)
    bytes_per_row = hidden * embed_table.dtype.itemsize

    out_flat = pl.pallas_call(
        kernel,
        out_shape=jax.ShapeDtypeStruct((n_total, hidden), embed_table.dtype),
        grid_spec=pltpu.PrefetchScalarGridSpec(
            num_scalar_prefetch=1,                           # ids -> SMEM
            grid=grid,
            in_specs=[pl.BlockSpec(memory_space=pl.ANY)],    # table stays in HBM
            out_specs=pl.BlockSpec((tile, hidden), lambda i, ids: (i, 0)),
            scratch_shapes=[pltpu.SemaphoreType.DMA((in_flight,))],
        ),
        compiler_params=pltpu.CompilerParams(
            dimension_semantics=("parallel",),
            vmem_limit_bytes=32 * 1024 * 1024,               # v7x-safe budget
        ),
        cost_estimate=pl.CostEstimate(
            flops=0,
            transcendentals=0,
            bytes_accessed=2 * n_total * bytes_per_row + 4 * n_total),
    )(ids_flat, embed_table)

    if n_total != n_tokens:
        out_flat = out_flat[:n_tokens]
    return out_flat.reshape(batch_flat, seq_len, hidden)


def _reference_embed(input_ids, embed_table):
    seq_len = input_ids.shape[-1]
    ids_2d = input_ids.reshape(-1, seq_len)
    return jnp.take(embed_table, ids_2d, axis=0)


if __name__ == "__main__":
    key = jax.random.PRNGKey(0)
    k_tab, k_ids, k_tab2, k_ids2 = jax.random.split(key, 4)

    # --- Small config matching the module spec: batch=2, seq=8, hidden=32.
    vocab_size, hidden_size = 64, 32
    batch, seq = 2, 8
    embed_table = (jax.random.normal(k_tab, (vocab_size, hidden_size),
                                     dtype=jnp.float32) * 0.02)
    input_ids = jax.random.randint(k_ids, (batch, seq), 0, vocab_size,
                                   dtype=jnp.int32)

    out = gpt_embeddings_forward(input_ids, embed_table)
    out = jax.block_until_ready(out)
    ref = _reference_embed(input_ids, embed_table)
    assert out.shape == (batch, seq, hidden_size)
    assert jnp.array_equal(out, ref), "mismatch vs reference (small config)"

    # --- Multi-tile config: exercises grid > 1 and the DMA pipeline window.
    vocab2, hidden2 = 512, 128
    batch2, seq2 = 2, 200   # 400 tokens -> tile=200, grid=(2,), no padding
    table2 = (jax.random.normal(k_tab2, (vocab2, hidden2),
                                dtype=jnp.float32) * 0.02)
    ids2 = jax.random.randint(k_ids2, (batch2, seq2), 0, vocab2,
                              dtype=jnp.int32)

    out2 = gpt_embeddings_forward(ids2, table2)
    out2 = jax.block_until_ready(out2)
    ref2 = _reference_embed(ids2, table2)
    assert out2.shape == (batch2, seq2, hidden2)
    assert jnp.array_equal(out2, ref2), "mismatch vs reference (multi-tile)"

    print("KERNEL_OK")
</pallas_src>

<mosaic_0001>
module attributes {stable_mosaic.version = 11 : i64} {
  func.func @_embed_gather_kernel(%arg0: i32, %arg1: memref<16xi32, #tpu.memory_space<smem>>, %arg2: memref<64x32xf32, #tpu.memory_space<any>>, %arg3: memref<16x32xf32, #tpu.memory_space<vmem>>, %arg4: memref<8x!tpu.dma_semaphore, #tpu.memory_space<semaphore_mem>>) attributes {dimension_semantics = [#tpu.dimension_semantics<parallel>], iteration_bounds = array<i64: 1>, scalar_prefetch = 1 : i64, scratch_operands = 1 : i64, tpu.core_type = #tpu.core_type<tc>, window_params = [{}, {transform_indices = @transform_1, window_bounds = array<i64: 16, 32>}]} {
    %c16_i32 = arith.constant 16 : i32
    %0 = arith.muli %arg0, %c16_i32 : i32
    %c0_i32 = arith.constant 0 : i32
    %1 = arith.addi %0, %c0_i32 : i32
    %2 = arith.index_cast %1 : i32 to index
    %3 = memref.load %arg1[%2] : memref<16xi32, #tpu.memory_space<smem>>
    %c0_i32_0 = arith.constant 0 : i32
    %c0_i32_1 = arith.constant 0 : i32
    %4 = tpu.memref_slice %arg2[%3, %c0_i32_1] : memref<64x32xf32, #tpu.memory_space<any>> -> memref<1x32xf32, #tpu.memory_space<any>>
    %c0_i32_2 = arith.constant 0 : i32
    %c0_i32_3 = arith.constant 0 : i32
    %5 = tpu.memref_slice %arg3[%c0_i32_2, %c0_i32_3] : memref<16x32xf32, #tpu.memory_space<vmem>> -> memref<1x32xf32, #tpu.memory_space<vmem>>
    %6 = tpu.memref_slice %arg4[%c0_i32_0] : memref<8x!tpu.dma_semaphore, #tpu.memory_space<semaphore_mem>> -> memref<1x!tpu.dma_semaphore, #tpu.memory_space<semaphore_mem>>
    %7 = tpu.memref_squeeze %6 : memref<1x!tpu.dma_semaphore, #tpu.memory_space<semaphore_mem>> -> memref<!tpu.dma_semaphore, #tpu.memory_space<semaphore_mem>>
    tpu.enqueue_dma source(%4 : memref<1x32xf32, #tpu.memory_space<any>>) target(%5 : memref<1x32xf32, #tpu.memory_space<vmem>>) target_semaphore(%7 : memref<!tpu.dma_semaphore, #tpu.memory_space<semaphore_mem>>)
    %c1_i32 = arith.constant 1 : i32
    %8 = arith.addi %0, %c1_i32 : i32
    %9 = arith.index_cast %8 : i32 to index
    %10 = memref.load %arg1[%9] : memref<16xi32, #tpu.memory_space<smem>>
    %c1_i32_4 = arith.constant 1 : i32
    %c0_i32_5 = arith.constant 0 : i32
    %11 = tpu.memref_slice %arg2[%10, %c0_i32_5] : memref<64x32xf32, #tpu.memory_space<any>> -> memref<1x32xf32, #tpu.memory_space<any>>
    %c1_i32_6 = arith.constant 1 : i32
    %c0_i32_7 = arith.constant 0 : i32
    %12 = tpu.memref_slice %arg3[%c1_i32_6, %c0_i32_7] : memref<16x32xf32, #tpu.memory_space<vmem>> -> memref<1x32xf32, #tpu.memory_space<vmem>>
    %13 = tpu.memref_slice %arg4[%c1_i32_4] : memref<8x!tpu.dma_semaphore, #tpu.memory_space<semaphore_mem>> -> memref<1x!tpu.dma_semaphore, #tpu.memory_space<semaphore_mem>>
    %14 = tpu.memref_squeeze %13 : memref<1x!tpu.dma_semaphore, #tpu.memory_space<semaphore_mem>> -> memref<!tpu.dma_semaphore, #tpu.memory_space<semaphore_mem>>
    tpu.enqueue_dma source(%11 : memref<1x32xf32, #tpu.memory_space<any>>) target(%12 : memref<1x32xf32, #tpu.memory_space<vmem>>) target_semaphore(%14 : memref<!tpu.dma_semaphore, #tpu.memory_space<semaphore_mem>>)
    %c2_i32 = arith.constant 2 : i32
    %15 = arith.addi %0, %c2_i32 : i32
    %16 = arith.index_cast %15 : i32 to index
    %17 = memref.load %arg1[%16] : memref<16xi32, #tpu.memory_space<smem>>
    %c2_i32_8 = arith.constant 2 : i32
    %c0_i32_9 = arith.constant 0 : i32
    %18 = tpu.memref_slice %arg2[%17, %c0_i32_9] : memref<64x32xf32, #tpu.memory_space<any>> -> memref<1x32xf32, #tpu.memory_space<any>>
    %c2_i32_10 = arith.constant 2 : i32
    %c0_i32_11 = arith.constant 0 : i32
    %19 = tpu.memref_slice %arg3[%c2_i32_10, %c0_i32_11] : memref<16x32xf32, #tpu.memory_space<vmem>> -> memref<1x32xf32, #tpu.memory_space<vmem>>
    %20 = tpu.memref_slice %arg4[%c2_i32_8] : memref<8x!tpu.dma_semaphore, #tpu.memory_space<semaphore_mem>> -> memref<1x!tpu.dma_semaphore, #tpu.memory_space<semaphore_mem>>
    %21 = tpu.memref_squeeze %20 : memref<1x!tpu.dma_semaphore, #tpu.memory_space<semaphore_mem>> -> memref<!tpu.dma_semaphore, #tpu.memory_space<semaphore_mem>>
    tpu.enqueue_dma source(%18 : memref<1x32xf32, #tpu.memory_space<any>>) target(%19 : memref<1x32xf32, #tpu.memory_space<vmem>>) target_semaphore(%21 : memref<!tpu.dma_semaphore, #tpu.memory_space<semaphore_mem>>)
    %c3_i32 = arith.constant 3 : i32
    %22 = arith.addi %0, %c3_i32 : i32
    %23 = arith.index_cast %22 : i32 to index
    %24 = memref.load %arg1[%23] : memref<16xi32, #tpu.memory_space<smem>>
    %c3_i32_12 = arith.constant 3 : i32
    %c0_i32_13 = arith.constant 0 : i32
    %25 = tpu.memref_slice %arg2[%24, %c0_i32_13] : memref<64x32xf32, #tpu.memory_space<any>> -> memref<1x32xf32, #tpu.memory_space<any>>
    %c3_i32_14 = arith.constant 3 : i32
    %c0_i32_15 = arith.constant 0 : i32
    %26 = tpu.memref_slice %arg3[%c3_i32_14, %c0_i32_15] : memref<16x32xf32, #tpu.memory_space<vmem>> -> memref<1x32xf32, #tpu.memory_space<vmem>>
    %27 = tpu.memref_slice %arg4[%c3_i32_12] : memref<8x!tpu.dma_semaphore, #tpu.memory_space<semaphore_mem>> -> memref<1x!tpu.dma_semaphore, #tpu.memory_space<semaphore_mem>>
    %28 = tpu.memref_squeeze %27 : memref<1x!tpu.dma_semaphore, #tpu.memory_space<semaphore_mem>> -> memref<!tpu.dma_semaphore, #tpu.memory_space<semaphore_mem>>
    tpu.enqueue_dma source(%25 : memref<1x32xf32, #tpu.memory_space<any>>) target(%26 : memref<1x32xf32, #tpu.memory_space<vmem>>) target_semaphore(%28 : memref<!tpu.dma_semaphore, #tpu.memory_space<semaphore_mem>>)
    %c4_i32 = arith.constant 4 : i32
    %29 = arith.addi %0, %c4_i32 : i32
    %30 = arith.index_cast %29 : i32 to index
    %31 = memref.load %arg1[%30] : memref<16xi32, #tpu.memory_space<smem>>
    %c4_i32_16 = arith.constant 4 : i32
    %c0_i32_17 = arith.constant 0 : i32
    %32 = tpu.memref_slice %arg2[%31, %c0_i32_17] : memref<64x32xf32, #tpu.memory_space<any>> -> memref<1x32xf32, #tpu.memory_space<any>>
    %c4_i32_18 = arith.constant 4 : i32
    %c0_i32_19 = arith.constant 0 : i32
    %33 = tpu.memref_slice %arg3[%c4_i32_18, %c0_i32_19] : memref<16x32xf32, #tpu.memory_space<vmem>> -> memref<1x32xf32, #tpu.memory_space<vmem>>
    %34 = tpu.memref_slice %arg4[%c4_i32_16] : memref<8x!tpu.dma_semaphore, #tpu.memory_space<semaphore_mem>> -> memref<1x!tpu.dma_semaphore, #tpu.memory_space<semaphore_mem>>
    %35 = tpu.memref_squeeze %34 : memref<1x!tpu.dma_semaphore, #tpu.memory_space<semaphore_mem>> -> memref<!tpu.dma_semaphore, #tpu.memory_space<semaphore_mem>>
    tpu.enqueue_dma source(%32 : memref<1x32xf32, #tpu.memory_space<any>>) target(%33 : memref<1x32xf32, #tpu.memory_space<vmem>>) target_semaphore(%35 : memref<!tpu.dma_semaphore, #tpu.memory_space<semaphore_mem>>)
    %c5_i32 = arith.constant 5 : i32
    %36 = arith.addi %0, %c5_i32 : i32
    %37 = arith.index_cast %36 : i32 to index
    %38 = memref.load %arg1[%37] : memref<16xi32, #tpu.memory_space<smem>>
    %c5_i32_20 = arith.constant 5 : i32
    %c0_i32_21 = arith.constant 0 : i32
    %39 = tpu.memref_slice %arg2[%38, %c0_i32_21] : memref<64x32xf32, #tpu.memory_space<any>> -> memref<1x32xf32, #tpu.memory_space<any>>
    %c5_i32_22 = arith.constant 5 : i32
    %c0_i32_23 = arith.constant 0 : i32
    %40 = tpu.memref_slice %arg3[%c5_i32_22, %c0_i32_23] : memref<16x32xf32, #tpu.memory_space<vmem>> -> memref<1x32xf32, #tpu.memory_space<vmem>>
    %41 = tpu.memref_slice %arg4[%c5_i32_20] : memref<8x!tpu.dma_semaphore, #tpu.memory_space<semaphore_mem>> -> memref<1x!tpu.dma_semaphore, #tpu.memory_space<semaphore_mem>>
    %42 = tpu.memref_squeeze %41 : memref<1x!tpu.dma_semaphore, #tpu.memory_space<semaphore_mem>> -> memref<!tpu.dma_semaphore, #tpu.memory_space<semaphore_mem>>
    tpu.enqueue_dma source(%39 : memref<1x32xf32, #tpu.memory_space<any>>) target(%40 : memref<1x32xf32, #tpu.memory_space<vmem>>) target_semaphore(%42 : memref<!tpu.dma_semaphore, #tpu.memory_space<semaphore_mem>>)
    %c6_i32 = arith.constant 6 : i32
    %43 = arith.addi %0, %c6_i32 : i32
    %44 = arith.index_cast %43 : i32 to index
    %45 = memref.load %arg1[%44] : memref<16xi32, #tpu.memory_space<smem>>
    %c6_i32_24 = arith.constant 6 : i32
    %c0_i32_25 = arith.constant 0 : i32
    %46 = tpu.memref_slice %arg2[%45, %c0_i32_25] : memref<64x32xf32, #tpu.memory_space<any>> -> memref<1x32xf32, #tpu.memory_space<any>>
    %c6_i32_26 = arith.constant 6 : i32
    %c0_i32_27 = arith.constant 0 : i32
    %47 = tpu.memref_slice %arg3[%c6_i32_26, %c0_i32_27] : memref<16x32xf32, #tpu.memory_space<vmem>> -> memref<1x32xf32, #tpu.memory_space<vmem>>
    %48 = tpu.memref_slice %arg4[%c6_i32_24] : memref<8x!tpu.dma_semaphore, #tpu.memory_space<semaphore_mem>> -> memref<1x!tpu.dma_semaphore, #tpu.memory_space<semaphore_mem>>
    %49 = tpu.memref_squeeze %48 : memref<1x!tpu.dma_semaphore, #tpu.memory_space<semaphore_mem>> -> memref<!tpu.dma_semaphore, #tpu.memory_space<semaphore_mem>>
    tpu.enqueue_dma source(%46 : memref<1x32xf32, #tpu.memory_space<any>>) target(%47 : memref<1x32xf32, #tpu.memory_space<vmem>>) target_semaphore(%49 : memref<!tpu.dma_semaphore, #tpu.memory_space<semaphore_mem>>)
    %c7_i32 = arith.constant 7 : i32
    %50 = arith.addi %0, %c7_i32 : i32
    %51 = arith.index_cast %50 : i32 to index
    %52 = memref.load %arg1[%51] : memref<16xi32, #tpu.memory_space<smem>>
    %c7_i32_28 = arith.constant 7 : i32
    %c0_i32_29 = arith.constant 0 : i32
    %53 = tpu.memref_slice %arg2[%52, %c0_i32_29] : memref<64x32xf32, #tpu.memory_space<any>> -> memref<1x32xf32, #tpu.memory_space<any>>
    %c7_i32_30 = arith.constant 7 : i32
    %c0_i32_31 = arith.constant 0 : i32
    %54 = tpu.memref_slice %arg3[%c7_i32_30, %c0_i32_31] : memref<16x32xf32, #tpu.memory_space<vmem>> -> memref<1x32xf32, #tpu.memory_space<vmem>>
    %55 = tpu.memref_slice %arg4[%c7_i32_28] : memref<8x!tpu.dma_semaphore, #tpu.memory_space<semaphore_mem>> -> memref<1x!tpu.dma_semaphore, #tpu.memory_space<semaphore_mem>>
    %56 = tpu.memref_squeeze %55 : memref<1x!tpu.dma_semaphore, #tpu.memory_space<semaphore_mem>> -> memref<!tpu.dma_semaphore, #tpu.memory_space<semaphore_mem>>
    tpu.enqueue_dma source(%53 : memref<1x32xf32, #tpu.memory_space<any>>) target(%54 : memref<1x32xf32, #tpu.memory_space<vmem>>) target_semaphore(%56 : memref<!tpu.dma_semaphore, #tpu.memory_space<semaphore_mem>>)
    %c0_i32_32 = arith.constant 0 : i32
    %c16_i32_33 = arith.constant 16 : i32
    %57 = arith.addi %c0_i32_32, %c16_i32_33 : i32
    %c1_i32_34 = arith.constant 1 : i32
    scf.for %arg5 = %c0_i32_32 to %57 step %c1_i32_34  : i32 {
      %c8_i32 = arith.constant 8 : i32
      %c0_i32_36 = arith.constant 0 : i32
      %58 = arith.cmpi eq, %c8_i32, %c0_i32_36 : i32
      %c1_i32_37 = arith.constant 1 : i32
      %59 = arith.select %58, %c1_i32_37, %c8_i32 : i32
      %60 = arith.remsi %arg5, %59 : i32
      %c0_i32_38 = arith.constant 0 : i32
      %61 = arith.cmpi ne, %60, %c0_i32_38 : i32
      %c0_i32_39 = arith.constant 0 : i32
      %62 = arith.cmpi slt, %60, %c0_i32_39 : i32
      %c0_i32_40 = arith.constant 0 : i32
      %63 = arith.cmpi slt, %59, %c0_i32_40 : i32
      %64 = arith.xori %62, %63 : i1
      %65 = arith.andi %64, %61 : i1
      %66 = arith.addi %60, %59 : i32
      %67 = arith.select %65, %66, %60 : i32
      %c0_i32_41 = arith.constant 0 : i32
      %c0_i32_42 = arith.constant 0 : i32
      %68 = tpu.memref_slice %arg2[%c0_i32_41, %c0_i32_42] : memref<64x32xf32, #tpu.memory_space<any>> -> memref<1x32xf32, #tpu.memory_space<any>>
      %c0_i32_43 = arith.constant 0 : i32
      %69 = tpu.memref_slice %arg3[%arg5, %c0_i32_43] : memref<16x32xf32, #tpu.memory_space<vmem>> -> memref<1x32xf32, #tpu.memory_space<vmem>>
      %70 = tpu.memref_slice %arg4[%67] : memref<8x!tpu.dma_semaphore, #tpu.memory_space<semaphore_mem>> -> memref<1x!tpu.dma_semaphore, #tpu.memory_space<semaphore_mem>>
      %71 = tpu.memref_squeeze %70 : memref<1x!tpu.dma_semaphore, #tpu.memory_space<semaphore_mem>> -> memref<!tpu.dma_semaphore, #tpu.memory_space<semaphore_mem>>
      tpu.wait_dma2 semaphore(%71 : memref<!tpu.dma_semaphore, #tpu.memory_space<semaphore_mem>>) src(%68 : memref<1x32xf32, #tpu.memory_space<any>>) dst(%69 : memref<1x32xf32, #tpu.memory_space<vmem>>)
      %c8_i32_44 = arith.constant 8 : i32
      %72 = arith.addi %arg5, %c8_i32_44 : i32
      %c16_i32_45 = arith.constant 16 : i32
      %73 = arith.cmpi slt, %72, %c16_i32_45 : i32
      %74 = arith.extui %73 : i1 to i32
      %c0_i32_46 = arith.constant 0 : i32
      %75 = arith.cmpi ne, %74, %c0_i32_46 : i32
      scf.if %75 {
        %c8_i32_47 = arith.constant 8 : i32
        %76 = arith.addi %arg5, %c8_i32_47 : i32
        %77 = arith.addi %0, %76 : i32
        %78 = arith.index_cast %77 : i32 to index
        %79 = memref.load %arg1[%78] : memref<16xi32, #tpu.memory_space<smem>>
        %c8_i32_48 = arith.constant 8 : i32
        %c0_i32_49 = arith.constant 0 : i32
        %80 = arith.cmpi eq, %c8_i32_48, %c0_i32_49 : i32
        %c1_i32_50 = arith.constant 1 : i32
        %81 = arith.select %80, %c1_i32_50, %c8_i32_48 : i32
        %82 = arith.remsi %76, %81 : i32
        %c0_i32_51 = arith.constant 0 : i32
        %83 = arith.cmpi ne, %82, %c0_i32_51 : i32
        %c0_i32_52 = arith.constant 0 : i32
        %84 = arith.cmpi slt, %82, %c0_i32_52 : i32
        %c0_i32_53 = arith.constant 0 : i32
        %85 = arith.cmpi slt, %81, %c0_i32_53 : i32
        %86 = arith.xori %84, %85 : i1
        %87 = arith.andi %86, %83 : i1
        %88 = arith.addi %82, %81 : i32
        %89 = arith.select %87, %88, %82 : i32
        %c0_i32_54 = arith.constant 0 : i32
        %90 = tpu.memref_slice %arg2[%79, %c0_i32_54] : memref<64x32xf32, #tpu.memory_space<any>> -> memref<1x32xf32, #tpu.memory_space<any>>
        %c0_i32_55 = arith.constant 0 : i32
        %91 = tpu.memref_slice %arg3[%76, %c0_i32_55] : memref<16x32xf32, #tpu.memory_space<vmem>> -> memref<1x32xf32, #tpu.memory_space<vmem>>
        %92 = tpu.memref_slice %arg4[%89] : memref<8x!tpu.dma_semaphore, #tpu.memory_space<semaphore_mem>> -> memref<1x!tpu.dma_semaphore, #tpu.memory_space<semaphore_mem>>
        %93 = tpu.memref_squeeze %92 : memref<1x!tpu.dma_semaphore, #tpu.memory_space<semaphore_mem>> -> memref<!tpu.dma_semaphore, #tpu.memory_space<semaphore_mem>>
        tpu.enqueue_dma source(%90 : memref<1x32xf32, #tpu.memory_space<any>>) target(%91 : memref<1x32xf32, #tpu.memory_space<vmem>>) target_semaphore(%93 : memref<!tpu.dma_semaphore, #tpu.memory_space<semaphore_mem>>)
      } else {
      }
    }
    %c16_i32_35 = arith.constant 16 : i32
    return
  }
  func.func @transform_1(%arg0: i32, %arg1: memref<16xi32, #tpu.memory_space<smem>>) -> (i32, i32) {
    %c0_i32 = arith.constant 0 : i32
    %c0_i32_0 = arith.constant 0 : i32
    return %arg0, %c0_i32 : i32, i32
  }
}

</mosaic_0001>

<bundles_post_ra>
// kernel: tpu_custom_call.1
= control target key start
LH: loop header
LB: loop body
LE: loop exit
PB: predicated region body
PF: predicated region fallthrough
CT: control target
= control target key end

     0   :  { %s837_s0 = inlined_call_operand.vmem [shape: s32[16], index: 0, kind: input, shape index: {}]   ;;  %s838_s1 = inlined_call_operand.vmem [shape: f32[64,32], index: 1, kind: input, shape index: {}]   ;;  %s839_s2 = inlined_call_operand.hbm [shape: f32[16,32], index: 2, kind: output, shape index: {}]  }
   0x1   :  { %s7_s11 = sshll.u32 %s837_s0, 4  ;;  %s8_s11 = int_to_ptr.vmem [resolvable:$true] %s7_s11 }
   0x2   :  { %s715_s12 = scalar_lea.vmem %s8_s11, 16  ;;  %p720_p1 = scmp.lt.s32.totalorder %s8_s11, %s8_s11 }
   0x3   :  { %p716_p0 = scmp.ne.s32.totalorder %s8_s11, %s715_s12  ;;  %p721_p2 = scmp.lt.s32.totalorder %s715_s12, %s715_s12 }
   0x5   :  { %p722_p3 = por %p721_p2, %p720_p1 }
   0x7   :  { %p723_p4 = pnand %p722_p3, %p716_p0 }
   0x9   :  { %726 = shalt.err (!%p723_p4)  }
   0xa   :  { %s763_s13 = smov [#allocation4]  }
   0xb   :  { %10 = dma.vmem_to_smem %s8_s11, 16, %s763_s13, [#allocation3] }
   0xc   :  { %753 = dma.done.wait [#allocation3], 16 }
   0xd   :  { %754 = vsyncadd [#allocation3], 4294967280 }
   0xe   :  { %12 = sfence }
   0xf   :  { %13 = vsyncpa [#allocation6], 0  ;;  %s15_s14 = sld [smem:[#allocation4]] }
  0x15   :  { %s16_s17 = scalar_lea.vmem %s838_s1, %s15_s14 }
  0x16   :  { %v34_v0 = vld [vmem:[%s16_s17] sm:$0x1] }
  0x17   :  { %35 = vst [vmem:[#allocation5] sm:$0x1] %v34_v0 }
  0x18   :  { %60 = vsyncadd [#allocation2], 16  ;;  %s679_s0 = sld [smem:[#allocation4 + $0x1]] }
  0x1e   :  { %s63_s20 = scalar_lea.vmem %s838_s1, %s679_s0 }
  0x1f   :  { %v83_v1 = vld [vmem:[%s63_s20] sm:$0x1] }
  0x20   :  { %84 = vst [vmem:[#allocation5 + $0x1] sm:$0x1] %v83_v1 }
  0x21   :  { %109 = vsyncadd [#allocation2 + $0x1], 16  ;;  %s680_s21 = sld [smem:[#allocation4 + $0x2]] }
  0x27   :  { %s112_s24 = scalar_lea.vmem %s838_s1, %s680_s21 }
  0x28   :  { %v132_v2 = vld [vmem:[%s112_s24] sm:$0x1] }
  0x29   :  { %133 = vst [vmem:[#allocation5 + $0x2] sm:$0x1] %v132_v2 }
  0x2a   :  { %158 = vsyncadd [#allocation2 + $0x2], 16  ;;  %s681_s25 = sld [smem:[#allocation4 + $0x3]] }
  0x30   :  { %s161_s28 = scalar_lea.vmem %s838_s1, %s681_s25 }
  0x31   :  { %v181_v3 = vld [vmem:[%s161_s28] sm:$0x1] }
  0x32   :  { %182 = vst [vmem:[#allocation5 + $0x3] sm:$0x1] %v181_v3 }
  0x33   :  { %207 = vsyncadd [#allocation2 + $0x3], 16  ;;  %s682_s29 = sld [smem:[#allocation4 + $0x4]] }
  0x39   :  { %s210_s4 = scalar_lea.vmem %s838_s1, %s682_s29 }
  0x3a   :  { %v230_v4 = vld [vmem:[%s210_s4] sm:$0x1] }
  0x3b   :  { %231 = vst [vmem:[#allocation5 + $0x4] sm:$0x1] %v230_v4 }
  0x3c   :  { %256 = vsyncadd [#allocation2 + $0x4], 16  ;;  %s683_s5 = sld [smem:[#allocation4 + $0x5]] }
  0x42   :  { %s259_s8 = scalar_lea.vmem %s838_s1, %s683_s5 }
  0x43   :  { %v279_v5 = vld [vmem:[%s259_s8] sm:$0x1] }
  0x44   :  { %280 = vst [vmem:[#allocation5 + $0x5] sm:$0x1] %v279_v5 }
  0x45   :  { %305 = vsyncadd [#allocation2 + $0x5], 16  ;;  %s684_s9 = sld [smem:[#allocation4 + $0x6]] }
  0x4b   :  { %s308_s12 = scalar_lea.vmem %s838_s1, %s684_s9 }
  0x4c   :  { %v328_v6 = vld [vmem:[%s308_s12] sm:$0x1] }
  0x4d   :  { %329 = vst [vmem:[#allocation5 + $0x6] sm:$0x1] %v328_v6 }
  0x4e   :  { %354 = vsyncadd [#allocation2 + $0x6], 16  ;;  %s685_s13 = sld [smem:[#allocation4 + $0x7]] }
  0x54   :  { %s357_s16 = scalar_lea.vmem %s838_s1, %s685_s13 }
  0x55   :  { %v377_v7 = vld [vmem:[%s357_s16] sm:$0x1] }
  0x56   :  { %378 = vst [vmem:[#allocation5 + $0x7] sm:$0x1] %v377_v7 }
  0x57   :  { %403 = vsyncadd [#allocation2 + $0x7], 16  ;;  %s809_s17 = smov 0  }
  0x58 LB: > { %p410_p5 = scmp.lt.s32.totalorder %s761_s17, 0  ;;  %s411_s0 = ssub.s32 0, %s761_s17  ;;  %s761_s17 = sphi %s809_s17, %s409_s17  }
  0x59   : > { %s686_s18 = smin.u32 %s761_s17, %s411_s0 }
  0x5a   : > { %s413_s19 = sand.u32 7, %s686_s18  }
  0x5b   : > { %s414_s20 = ssub.s32 0, %s413_s19 }
  0x5c   : > { %s841_s20 = smov (!%p410_p5, %s414_s20), %s413_s19 }
  0x5d   : > { %p688_p6 = scmp.lt.s32.totalorder %s841_s20, 0  ;;  %s420_s21 = sadd.s32 8, %s841_s20 }
  0x5f   : > { %s843_s21 = smov (!%p688_p6, %s420_s21), %s841_s20 }
  0x60   : > { %s422_s22 = scalar_lea.sflag [#allocation2], %s843_s21 }
  0x61   : > { %755 = dma.done.wait %s422_s22, 16 }
  0x62   : > { %756 = vsyncadd %s422_s22, 4294967280  ;;  %s426_s23 = sadd.s32 8, %s761_s17 }
  0x63   : > { %p689_p7 = scmp.ge.s32.totalorder %s426_s23, 16 }
  0x64   : > { %s432_s24 = sld [smem:[#allocation4 + %s426_s23]] (!%p689_p7)  ;;  %p433_p8 = scmp.lt.s32.totalorder (!%p689_p7), %s426_s23, 0 }
  0x65   : > { %430 = sbr.rel (%p689_p7) target bundleno = 114 (0x72), region = 252  ;;  %s434_s25 = ssub.s32 (!%p689_p7), 0, %s426_s23 }
  0x66   : > { %s690_s26 = smin.u32 (!%p689_p7), %s434_s25, %s426_s23  ;;  %s596_s5 = scalar_lea.vmem (!%p689_p7), [#allocation5], %s761_s17 }
  0x67   : > { %s436_s27 = sand.u32 (!%p689_p7), 7, %s690_s26  }
  0x68   : > { %s437_s28 = ssub.s32 (!%p689_p7), 0, %s436_s27 }
  0x6a   : > { %s445_s3 = scalar_lea.vmem (!%p689_p7), %s838_s1, %s432_s24 }
  0x6b   : > { %v465_v8 = vld [vmem:[%s445_s3] sm:$0x1] (!%p689_p7) }
  0x6c   : > { %s845_s28 = smov (!%p433_p8, %s437_s28), %s436_s27  ;;  %694 = vst [vmem:[%s596_s5 + $0x8] sm:$0x1] %v465_v8 }
  0x6d   : > { %p692_p9 = scmp.lt.s32.totalorder %s845_s28, 0  ;;  %s443_s4 = sadd.s32 8, %s845_s28 }
  0x6f   : > { %s847_s4 = smov (!%p692_p9, %s443_s4), %s845_s28 }
  0x70   : > { %s447_s6 = scalar_lea.sflag [#allocation2], %s847_s4 }
  0x71   : > { %491 = vsyncadd %s447_s6, 16 }
  0x72 PF: > { %s409_s17 = sadd.s32 1, %s761_s17  }
  0x73   : > { %p406_p10 = scmp.ge.s32.totalorder %s409_s17, 16  }
  0x74   :  { %s764_s7 = smov (%p406_p10), [#allocation5]  }
  0x75   :  { %408 = sbr.rel (!%p406_p10) target bundleno = 88 (0x58), region = 424  ;;  %s497_s8 = sshll.u32 (%p406_p10), %s764_s7, 4  ;;  %s498_s8 = int_to_ptr.vmem [resolvable:$true] %s497_s8 }
  0x76   :  { %s727_s9 = scalar_lea.vmem (%p406_p10), %s498_s8, 256  ;;  %p732_p12 = scmp.lt.s32.totalorder (%p406_p10), %s498_s8, %s498_s8 }
  0x77   :  { %p728_p11 = scmp.ne.s32.totalorder (%p406_p10), %s498_s8, %s727_s9  ;;  %p733_p13 = scmp.lt.s32.totalorder (%p406_p10), %s727_s9, %s727_s9 }
  0x79   :  { %p734_p0 = por (%p406_p10), %p733_p13, %p732_p12 }
  0x7b   :  { %p735_p1 = pnand (%p406_p10), %p734_p0, %p728_p11 }
  0x7d   :  { %738 = shalt.err (!%p735_p1)
}
  0x7e   :  { %s739_s12 = scalar_lea.hbm %s839_s2, 256 }
  0x7f   :  { %p740_p2 = scmp.ne.s32.totalorder %s839_s2, %s739_s12  ;;  %p743_p3 = scmp.lt.u32.totalorder %s739_s12, %s839_s2 }
  0x81   :  { %p745_p4 = pnand %p743_p3, %p740_p2 }
  0x83   :  { %748 = shalt.err (!%p745_p4)
}
  0x84   :  { %s765_s1 = smov 128   ;;  %s766_s17 = smov 8  }
  0x85   :  { %503 = dma.vmem_to_hbm [thread:$0]  %s498_s8, 256, %s839_s2, [#allocation6], %s765_s1, %s765_s1, %s766_s17  }
  0x86   :  { %757 = dma.done.wait [#allocation6], 256  }
  0x87   :  { %758 = vsyncadd [#allocation6], 4294967040 }
  0x88   :  { %507 = vsyncpa [#allocation6], 1 }
  0x89   :  { %508 = vsyncmov [#allocation2] }
  0x8c   :  { %s509_s19 = vpop.sfrf %508 }
  0x8d   :  { %p695_p5 = scmp.ne.s32.totalorder %s509_s19, 0 }
  0x8f   :  { %513 = shalt.err (%p695_p5)  }
  0x90   :  { %515 = vsyncmov [#allocation2 + $0x1] }
  0x93   :  { %s516_s20 = vpop.sfrf %515 }
  0x94   :  { %p696_p6 = scmp.ne.s32.totalorder %s516_s20, 0 }
  0x96   :  { %520 = shalt.err (%p696_p6)  }
  0x97   :  { %522 = vsyncmov [#allocation2 + $0x2] }
  0x9a   :  { %s523_s21 = vpop.sfrf %522 }
  0x9b   :  { %p697_p7 = scmp.ne.s32.totalorder %s523_s21, 0 }
  0x9d   :  { %527 = shalt.err (%p697_p7)  }
  0x9e   :  { %529 = vsyncmov [#allocation2 + $0x3] }
  0xa1   :  { %s530_s22 = vpop.sfrf %529 }
  0xa2   :  { %p698_p8 = scmp.ne.s32.totalorder %s530_s22, 0 }
  0xa4   :  { %534 = shalt.err (%p698_p8)  }
  0xa5   :  { %536 = vsyncmov [#allocation2 + $0x4] }
  0xa8   :  { %s537_s2 = vpop.sfrf %536 }
  0xa9   :  { %p699_p9 = scmp.ne.s32.totalorder %s537_s2, 0 }
  0xab   :  { %541 = shalt.err (%p699_p9)  }
  0xac   :  { %543 = vsyncmov [#allocation2 + $0x5] }
  0xaf   :  { %s544_s23 = vpop.sfrf %543 }
  0xb0   :  { %p700_p10 = scmp.ne.s32.totalorder %s544_s23, 0 }
  0xb2   :  { %548 = shalt.err (%p700_p10)  }
  0xb3   :  { %550 = vsyncmov [#allocation2 + $0x6] }
  0xb6   :  { %s551_s24 = vpop.sfrf %550 }
  0xb7   :  { %p701_p11 = scmp.ne.s32.totalorder %s551_s24, 0 }
  0xb9   :  { %555 = shalt.err (%p701_p11)  }
  0xba   :  { %557 = vsyncmov [#allocation2 + $0x7] }
  0xbd   :  { %s558_s25 = vpop.sfrf %557 }
  0xbe   :  { %p702_p12 = scmp.ne.s32.totalorder %s558_s25, 0 }
  0xc0   :  { %562 = shalt.err (%p702_p12)  }

</bundles_post_ra>
